<compile_context>
chip_gen: v7x
topology: tpu7x:2x2x1
jax: 0.10.0
libtpu: 0.0.40
codegen_flags: <defaults>
</compile_context>

<pallas_src>
import numpy as np
import jax
import jax.numpy as jnp
from jax import lax
from jax.experimental import pallas as pl
from jax.experimental.pallas import tpu as pltpu

MEL_LAMBDA = 45.0
FM_LAMBDA = 2.0

_TERM_ADV, _TERM_MEL, _TERM_FM = 0, 1, 2
_NUM_TERMS = 3

_LANE = 128
_ROW_ALIGN = 32                     # block-row multiple: safe sublane packing for f32/bf16/int8
_MAX_TILE_ROWS = 4096               # amortize ~0.35us/grid-step overhead (esp. v7x @ 3.2 TB/s)
_VMEM_BUF_BUDGET = 20 * 1024 * 1024  # total double-buffered input bytes; fits 32 MiB scoped VMEM


def _round_up(x, m):
    return -(-x // m) * m


def _as_2d(t):
    """Metadata-only reshape: merge leading dims, keep the last dim on lanes (no HBM copy)."""
    if t.ndim == 0:
        return t.reshape(1, 1)
    if t.ndim == 1:
        return t.reshape(1, t.shape[0])
    return t.reshape(-1, t.shape[-1])


def _make_index_map(start, nb):
    """Tensor owns grid steps [start, start+nb); clamp outside so no extra DMA is issued."""
    if nb == 1:
        return lambda i: (0, 0)

    def imap(i):
        return (jnp.clip(i - start, 0, nb - 1), 0)

    return imap


def _emit_item(i, acc_ref, plan, refs):
    """Emit the contribution of one tensor / tensor-pair, gated on its grid-step range."""
    start, nb, bt = plan["start"], plan["nb"], plan["bt"]
    R, C = plan["R"], plan["C"]
    term, weight, op = plan["term"], plan["weight"], plan["op"]

    @pl.when((i >= start) & (i < start + nb))
    def _():
        if op == "adv":
            x = refs[0][...].astype(jnp.float32)          # upcast in-kernel (native dtype in HBM)
            v = (x - 1.0) * (x - 1.0)
        else:  # "l1"
            a = refs[0][...].astype(jnp.float32)
            b = refs[1][...].astype(jnp.float32)
            v = jnp.abs(a - b)
        if R % bt != 0:
            # Last block of this tensor is partial: mask the stale padding rows.
            rows_left = R - (i - start) * bt
            row_id = lax.broadcasted_iota(jnp.int32, (bt, C), 0)
            v = jnp.where(row_id < rows_left, v, 0.0)
        # Per-tensor mean folded in as a compile-time 1/numel constant; block reduce is XLU,
        # accumulation is a single SMEM scalar (no full-tile VMEM accumulator, no weight slab).
        acc_ref[term, 0] = acc_ref[term, 0] + jnp.float32(weight) * jnp.sum(v)


def _fused_generator_loss_sums(specs):
    """specs: list of (op, tensors, term).  Returns (3,1) f32 = [adv_sum, mel_sum, fm_sum]."""
    if not specs:
        return jnp.zeros((_NUM_TERMS, 1), jnp.float32)

    share = max(1, _VMEM_BUF_BUDGET // len(specs))

    plans, flat_inputs, in_specs = [], [], []
    start = 0
    for op, tensors, term in specs:
        arrs = [_as_2d(t) for t in tensors]
        shape0 = arrs[0].shape
        for a in arrs[1:]:
            if a.shape != shape0:
                raise ValueError(f"mismatched shapes in loss pair: {a.shape} vs {shape0}")
        R, C = int(shape0[0]), int(shape0[1])
        itemsize = np.dtype(arrs[0].dtype).itemsize
        padded_c = _round_up(C, _LANE)                    # VMEM lane padding (HBM traffic is exact)
        row_bytes = len(arrs) * 2 * padded_c * itemsize   # double-buffered VMEM per block row
        cap = share // row_bytes
        if R <= max(cap, _ROW_ALIGN):
            bt = R                                        # whole tensor fits its VMEM share
        else:
            bt = max(_ROW_ALIGN, (min(cap, _MAX_TILE_ROWS) // _ROW_ALIGN) * _ROW_ALIGN)
        nb = -(-R // bt)

        numel = 1
        for d in tensors[0].shape:
            numel *= int(d)

        plans.append(dict(op=op, term=term, R=R, C=C, bt=bt, nb=nb, start=start,
                          weight=1.0 / float(numel), n_args=len(arrs)))
        imap = _make_index_map(start, nb)
        for a in arrs:
            flat_inputs.append(a)
            in_specs.append(pl.BlockSpec((bt, C), imap))  # full-width lane dim: any last dim OK
        start += nb

    total_blocks = start
    n_in = len(flat_inputs)

    def kernel(*refs):
        in_refs = refs[:n_in]
        o_ref = refs[n_in]
        acc_ref = refs[n_in + 1]
        i = pl.program_id(0)

        @pl.when(i == 0)
        def _():
            for j in range(_NUM_TERMS):
                acc_ref[j, 0] = jnp.float32(0.0)

        ridx = 0
        for plan in plans:
            _emit_item(i, acc_ref, plan, in_refs[ridx:ridx + plan["n_args"]])
            ridx += plan["n_args"]

        @pl.when(i == total_blocks - 1)
        def _():
            for j in range(_NUM_TERMS):
                o_ref[j, 0] = acc_ref[j, 0]

    out = pl.pallas_call(
        kernel,
        out_shape=jax.ShapeDtypeStruct((_NUM_TERMS, 1), jnp.float32),
        grid_spec=pltpu.PrefetchScalarGridSpec(
            num_scalar_prefetch=0,
            grid=(total_blocks,),
            in_specs=in_specs,
            out_specs=pl.BlockSpec((_NUM_TERMS, 1), lambda i: (0, 0),
                                   memory_space=pltpu.MemorySpace.SMEM),
            scratch_shapes=[pltpu.SMEM((_NUM_TERMS, 1), jnp.float32)],
        ),
        compiler_params=pltpu.CompilerParams(
            dimension_semantics=("arbitrary",),
            vmem_limit_bytes=64 * 1024 * 1024,
        ),
    )(*flat_inputs)
    return out


# ----------------------------------------------------------------------------
# GeneratorLoss forward
# ----------------------------------------------------------------------------
def generator_loss(disc_fake_outputs, mel_fake, mel_real, feats_real, feats_fake,
                   mel_lambda=MEL_LAMBDA, fm_lambda=FM_LAMBDA):
    specs = []
    for d in disc_fake_outputs:
        if d.size:                                        # guard zero-numel tensors (1/0 -> NaN)
            specs.append(("adv", (d,), _TERM_ADV))
    if mel_fake.size:
        specs.append(("l1", (mel_fake, mel_real), _TERM_MEL))
    for fr_disc, ff_disc in zip(feats_real, feats_fake):
        for fr, ff in zip(fr_disc, ff_disc):
            if fr.size:
                specs.append(("l1", (fr, ff), _TERM_FM))

    sums = _fused_generator_loss_sums(specs)
    adv_g_loss = sums[_TERM_ADV, 0]
    mel_loss = sums[_TERM_MEL, 0]
    fm_loss = sums[_TERM_FM, 0]
    loss = adv_g_loss + mel_lambda * mel_loss + fm_lambda * fm_loss
    return {
        "g_loss": loss,
        "adv_g_loss": adv_g_loss,
        "mel_loss": mel_loss,
        "fm_loss": fm_loss,
    }


# Pure-JAX reference for correctness checking
def _generator_loss_ref(disc_fake_outputs, mel_fake, mel_real, feats_real, feats_fake):
    adv = sum(jnp.mean((d.astype(jnp.float32) - 1.0) ** 2) for d in disc_fake_outputs)
    mel = jnp.mean(jnp.abs(mel_fake.astype(jnp.float32) - mel_real.astype(jnp.float32)))
    fm = jnp.float32(0.0)
    for fr_disc, ff_disc in zip(feats_real, feats_fake):
        for fr, ff in zip(fr_disc, ff_disc):
            fm = fm + jnp.mean(jnp.abs(fr.astype(jnp.float32) - ff.astype(jnp.float32)))
    return {
        "g_loss": adv + MEL_LAMBDA * mel + FM_LAMBDA * fm,
        "adv_g_loss": adv,
        "mel_loss": mel,
        "fm_loss": fm,
    }


if __name__ == "__main__":
    key = jax.random.PRNGKey(0)
    ks = list(jax.random.split(key, 16))
    B = 2

    # Two discriminators' outputs on generated audio
    disc_fake_outputs = [
        jax.random.normal(ks[0], (B, 32), jnp.float32),
        jax.random.normal(ks[1], (B, 24), jnp.float32),
    ]

    # Mel spectrograms (fake vs. real): [B, n_mels, frames]
    mel_fake = jax.random.normal(ks[2], (B, 8, 16), jnp.float32)
    mel_real = jax.random.normal(ks[3], (B, 8, 16), jnp.float32)

    # Feature maps from 2 discriminators, 2 layers each
    feats_real = [
        [jax.random.normal(ks[4], (B, 4, 32), jnp.float32),
         jax.random.normal(ks[5], (B, 8, 16), jnp.float32)],
        [jax.random.normal(ks[6], (B, 4, 24), jnp.float32),
         jax.random.normal(ks[7], (B, 8, 12), jnp.float32)],
    ]
    feats_fake = [
        [jax.random.normal(ks[8], (B, 4, 32), jnp.float32),
         jax.random.normal(ks[9], (B, 8, 16), jnp.float32)],
        [jax.random.normal(ks[10], (B, 4, 24), jnp.float32),
         jax.random.normal(ks[11], (B, 8, 12), jnp.float32)],
    ]

    loss_fn = jax.jit(generator_loss)
    out = loss_fn(disc_fake_outputs, mel_fake, mel_real, feats_real, feats_fake)
    out = jax.tree_util.tree_map(jax.block_until_ready, out)

    ref = _generator_loss_ref(disc_fake_outputs, mel_fake, mel_real, feats_real, feats_fake)
    for k in ("g_loss", "adv_g_loss", "mel_loss", "fm_loss"):
        assert jnp.allclose(out[k], ref[k], rtol=1e-5, atol=1e-5), (k, out[k], ref[k])

    print("KERNEL_OK")
</pallas_src>

<mosaic_0001>
module attributes {stable_mosaic.version = 11 : i64} {
  func.func @kernel(%arg0: i32, %arg1: memref<2x32xf32, #tpu.memory_space<vmem>>, %arg2: memref<2x24xf32, #tpu.memory_space<vmem>>, %arg3: memref<16x16xf32, #tpu.memory_space<vmem>>, %arg4: memref<16x16xf32, #tpu.memory_space<vmem>>, %arg5: memref<8x32xf32, #tpu.memory_space<vmem>>, %arg6: memref<8x32xf32, #tpu.memory_space<vmem>>, %arg7: memref<16x16xf32, #tpu.memory_space<vmem>>, %arg8: memref<16x16xf32, #tpu.memory_space<vmem>>, %arg9: memref<8x24xf32, #tpu.memory_space<vmem>>, %arg10: memref<8x24xf32, #tpu.memory_space<vmem>>, %arg11: memref<16x12xf32, #tpu.memory_space<vmem>>, %arg12: memref<16x12xf32, #tpu.memory_space<vmem>>, %arg13: memref<3x1xf32, #tpu.memory_space<smem>>, %arg14: memref<3x1xf32, #tpu.memory_space<smem>>) attributes {dimension_semantics = [#tpu.dimension_semantics<arbitrary>], iteration_bounds = array<i64: 7>, scalar_prefetch = 0 : i64, scratch_operands = 1 : i64, tpu.core_type = #tpu.core_type<tc>, window_params = [{pipeline_mode = #tpu.pipeline_mode<synchronous>, transform_indices = @transform_0, window_bounds = array<i64: 2, 32>}, {pipeline_mode = #tpu.pipeline_mode<synchronous>, transform_indices = @transform_1, window_bounds = array<i64: 2, 24>}, {pipeline_mode = #tpu.pipeline_mode<synchronous>, transform_indices = @transform_2, window_bounds = array<i64: 16, 16>}, {pipeline_mode = #tpu.pipeline_mode<synchronous>, transform_indices = @transform_3, window_bounds = array<i64: 16, 16>}, {pipeline_mode = #tpu.pipeline_mode<synchronous>, transform_indices = @transform_4, window_bounds = array<i64: 8, 32>}, {pipeline_mode = #tpu.pipeline_mode<synchronous>, transform_indices = @transform_5, window_bounds = array<i64: 8, 32>}, {pipeline_mode = #tpu.pipeline_mode<synchronous>, transform_indices = @transform_6, window_bounds = array<i64: 16, 16>}, {pipeline_mode = #tpu.pipeline_mode<synchronous>, transform_indices = @transform_7, window_bounds = array<i64: 16, 16>}, {pipeline_mode = #tpu.pipeline_mode<synchronous>, transform_indices = @transform_8, window_bounds = array<i64: 8, 24>}, {pipeline_mode = #tpu.pipeline_mode<synchronous>, transform_indices = @transform_9, window_bounds = array<i64: 8, 24>}, {pipeline_mode = #tpu.pipeline_mode<synchronous>, transform_indices = @transform_10, window_bounds = array<i64: 16, 12>}, {pipeline_mode = #tpu.pipeline_mode<synchronous>, transform_indices = @transform_11, window_bounds = array<i64: 16, 12>}, {transform_indices = @transform_12, window_bounds = array<i64: 3, 1>}]} {
    %c0_i32 = arith.constant 0 : i32
    %0 = arith.cmpi eq, %arg0, %c0_i32 : i32
    %1 = arith.extui %0 : i1 to i32
    %c0_i32_0 = arith.constant 0 : i32
    %2 = arith.cmpi ne, %1, %c0_i32_0 : i32
    scf.if %2 {
      %cst = arith.constant 0.000000e+00 : f32
      %c0 = arith.constant 0 : index
      %c0_17 = arith.constant 0 : index
      %41 = memref.load %arg14[%c0, %c0_17] : memref<3x1xf32, #tpu.memory_space<smem>>
      memref.store %cst, %arg14[%c0, %c0_17] : memref<3x1xf32, #tpu.memory_space<smem>>
      %cst_18 = arith.constant 0.000000e+00 : f32
      %c1 = arith.constant 1 : index
      %c0_19 = arith.constant 0 : index
      %42 = memref.load %arg14[%c1, %c0_19] : memref<3x1xf32, #tpu.memory_space<smem>>
      memref.store %cst_18, %arg14[%c1, %c0_19] : memref<3x1xf32, #tpu.memory_space<smem>>
      %cst_20 = arith.constant 0.000000e+00 : f32
      %c2 = arith.constant 2 : index
      %c0_21 = arith.constant 0 : index
      %43 = memref.load %arg14[%c2, %c0_21] : memref<3x1xf32, #tpu.memory_space<smem>>
      memref.store %cst_20, %arg14[%c2, %c0_21] : memref<3x1xf32, #tpu.memory_space<smem>>
    } else {
    }
    %c0_i32_1 = arith.constant 0 : i32
    %3 = arith.cmpi sge, %arg0, %c0_i32_1 : i32
    %c1_i32 = arith.constant 1 : i32
    %4 = arith.cmpi slt, %arg0, %c1_i32 : i32
    %5 = arith.andi %3, %4 : i1
    %6 = arith.extui %5 : i1 to i32
    %c0_i32_2 = arith.constant 0 : i32
    %7 = arith.cmpi ne, %6, %c0_i32_2 : i32
    scf.if %7 {
      %c0 = arith.constant 0 : index
      %c0_17 = arith.constant 0 : index
      %41 = vector.load %arg1[%c0, %c0_17] : memref<2x32xf32, #tpu.memory_space<vmem>>, vector<2x32xf32>
      %cst = arith.constant 1.000000e+00 : f32
      %42 = vector.broadcast %cst : f32 to vector<2x32xf32>
      %43 = arith.subf %41, %42 : vector<2x32xf32>
      %cst_18 = arith.constant 1.000000e+00 : f32
      %44 = vector.broadcast %cst_18 : f32 to vector<2x32xf32>
      %45 = arith.subf %41, %44 : vector<2x32xf32>
      %46 = arith.mulf %43, %45 : vector<2x32xf32>
      %c0_19 = arith.constant 0 : index
      %c0_20 = arith.constant 0 : index
      %47 = memref.load %arg14[%c0_19, %c0_20] : memref<3x1xf32, #tpu.memory_space<smem>>
      %48 = vector.shape_cast %46 : vector<2x32xf32> to vector<1x2x32xf32>
      %cst_21 = arith.constant dense<0.000000e+00> : vector<1xf32>
      %49 = vector.multi_reduction <add>, %48, %cst_21 [1, 2] : vector<1x2x32xf32> to vector<1xf32>
      %50 = vector.shape_cast %49 : vector<1xf32> to vector<1x1x1xf32>
      %51 = vector.extract %50[0, 0, 0] : f32 from vector<1x1x1xf32>
      %cst_22 = arith.constant 1.562500e-02 : f32
      %52 = arith.mulf %cst_22, %51 : f32
      %53 = arith.addf %47, %52 : f32
      %c0_23 = arith.constant 0 : index
      %c0_24 = arith.constant 0 : index
      %54 = memref.load %arg14[%c0_23, %c0_24] : memref<3x1xf32, #tpu.memory_space<smem>>
      memref.store %53, %arg14[%c0_23, %c0_24] : memref<3x1xf32, #tpu.memory_space<smem>>
    } else {
    }
    %c1_i32_3 = arith.constant 1 : i32
    %8 = arith.cmpi sge, %arg0, %c1_i32_3 : i32
    %c2_i32 = arith.constant 2 : i32
    %9 = arith.cmpi slt, %arg0, %c2_i32 : i32
    %10 = arith.andi %8, %9 : i1
    %11 = arith.extui %10 : i1 to i32
    %c0_i32_4 = arith.constant 0 : i32
    %12 = arith.cmpi ne, %11, %c0_i32_4 : i32
    scf.if %12 {
      %c0 = arith.constant 0 : index
      %c0_17 = arith.constant 0 : index
      %41 = vector.load %arg2[%c0, %c0_17] : memref<2x24xf32, #tpu.memory_space<vmem>>, vector<2x24xf32>
      %cst = arith.constant 1.000000e+00 : f32
      %42 = vector.broadcast %cst : f32 to vector<2x24xf32>
      %43 = arith.subf %41, %42 : vector<2x24xf32>
      %cst_18 = arith.constant 1.000000e+00 : f32
      %44 = vector.broadcast %cst_18 : f32 to vector<2x24xf32>
      %45 = arith.subf %41, %44 : vector<2x24xf32>
      %46 = arith.mulf %43, %45 : vector<2x24xf32>
      %c0_19 = arith.constant 0 : index
      %c0_20 = arith.constant 0 : index
      %47 = memref.load %arg14[%c0_19, %c0_20] : memref<3x1xf32, #tpu.memory_space<smem>>
      %48 = vector.shape_cast %46 : vector<2x24xf32> to vector<1x2x24xf32>
      %cst_21 = arith.constant dense<0.000000e+00> : vector<1xf32>
      %49 = vector.multi_reduction <add>, %48, %cst_21 [1, 2] : vector<1x2x24xf32> to vector<1xf32>
      %50 = vector.shape_cast %49 : vector<1xf32> to vector<1x1x1xf32>
      %51 = vector.extract %50[0, 0, 0] : f32 from vector<1x1x1xf32>
      %cst_22 = arith.constant 0.020833334 : f32
      %52 = arith.mulf %cst_22, %51 : f32
      %53 = arith.addf %47, %52 : f32
      %c0_23 = arith.constant 0 : index
      %c0_24 = arith.constant 0 : index
      %54 = memref.load %arg14[%c0_23, %c0_24] : memref<3x1xf32, #tpu.memory_space<smem>>
      memref.store %53, %arg14[%c0_23, %c0_24] : memref<3x1xf32, #tpu.memory_space<smem>>
    } else {
    }
    %c2_i32_5 = arith.constant 2 : i32
    %13 = arith.cmpi sge, %arg0, %c2_i32_5 : i32
    %c3_i32 = arith.constant 3 : i32
    %14 = arith.cmpi slt, %arg0, %c3_i32 : i32
    %15 = arith.andi %13, %14 : i1
    %16 = arith.extui %15 : i1 to i32
    %c0_i32_6 = arith.constant 0 : i32
    %17 = arith.cmpi ne, %16, %c0_i32_6 : i32
    scf.if %17 {
      %c0 = arith.constant 0 : index
      %c0_17 = arith.constant 0 : index
      %41 = vector.load %arg3[%c0, %c0_17] : memref<16x16xf32, #tpu.memory_space<vmem>>, vector<16x16xf32>
      %c0_18 = arith.constant 0 : index
      %c0_19 = arith.constant 0 : index
      %42 = vector.load %arg4[%c0_18, %c0_19] : memref<16x16xf32, #tpu.memory_space<vmem>>, vector<16x16xf32>
      %43 = arith.subf %41, %42 : vector<16x16xf32>
      %44 = math.absf %43 : vector<16x16xf32>
      %c1 = arith.constant 1 : index
      %c0_20 = arith.constant 0 : index
      %45 = memref.load %arg14[%c1, %c0_20] : memref<3x1xf32, #tpu.memory_space<smem>>
      %46 = vector.shape_cast %44 : vector<16x16xf32> to vector<1x16x16xf32>
      %cst = arith.constant dense<0.000000e+00> : vector<1xf32>
      %47 = vector.multi_reduction <add>, %46, %cst [1, 2] : vector<1x16x16xf32> to vector<1xf32>
      %48 = vector.shape_cast %47 : vector<1xf32> to vector<1x1x1xf32>
      %49 = vector.extract %48[0, 0, 0] : f32 from vector<1x1x1xf32>
      %cst_21 = arith.constant 3.906250e-03 : f32
      %50 = arith.mulf %cst_21, %49 : f32
      %51 = arith.addf %45, %50 : f32
      %c1_22 = arith.constant 1 : index
      %c0_23 = arith.constant 0 : index
      %52 = memref.load %arg14[%c1_22, %c0_23] : memref<3x1xf32, #tpu.memory_space<smem>>
      memref.store %51, %arg14[%c1_22, %c0_23] : memref<3x1xf32, #tpu.memory_space<smem>>
    } else {
    }
    %c3_i32_7 = arith.constant 3 : i32
    %18 = arith.cmpi sge, %arg0, %c3_i32_7 : i32
    %c4_i32 = arith.constant 4 : i32
    %19 = arith.cmpi slt, %arg0, %c4_i32 : i32
    %20 = arith.andi %18, %19 : i1
    %21 = arith.extui %20 : i1 to i32
    %c0_i32_8 = arith.constant 0 : i32
    %22 = arith.cmpi ne, %21, %c0_i32_8 : i32
    scf.if %22 {
      %c0 = arith.constant 0 : index
      %c0_17 = arith.constant 0 : index
      %41 = vector.load %arg5[%c0, %c0_17] : memref<8x32xf32, #tpu.memory_space<vmem>>, vector<8x32xf32>
      %c0_18 = arith.constant 0 : index
      %c0_19 = arith.constant 0 : index
      %42 = vector.load %arg6[%c0_18, %c0_19] : memref<8x32xf32, #tpu.memory_space<vmem>>, vector<8x32xf32>
      %43 = arith.subf %41, %42 : vector<8x32xf32>
      %44 = math.absf %43 : vector<8x32xf32>
      %c2 = arith.constant 2 : index
      %c0_20 = arith.constant 0 : index
      %45 = memref.load %arg14[%c2, %c0_20] : memref<3x1xf32, #tpu.memory_space<smem>>
      %46 = vector.shape_cast %44 : vector<8x32xf32> to vector<1x8x32xf32>
      %cst = arith.constant dense<0.000000e+00> : vector<1xf32>
      %47 = vector.multi_reduction <add>, %46, %cst [1, 2] : vector<1x8x32xf32> to vector<1xf32>
      %48 = vector.shape_cast %47 : vector<1xf32> to vector<1x1x1xf32>
      %49 = vector.extract %48[0, 0, 0] : f32 from vector<1x1x1xf32>
      %cst_21 = arith.constant 3.906250e-03 : f32
      %50 = arith.mulf %cst_21, %49 : f32
      %51 = arith.addf %45, %50 : f32
      %c2_22 = arith.constant 2 : index
      %c0_23 = arith.constant 0 : index
      %52 = memref.load %arg14[%c2_22, %c0_23] : memref<3x1xf32, #tpu.memory_space<smem>>
      memref.store %51, %arg14[%c2_22, %c0_23] : memref<3x1xf32, #tpu.memory_space<smem>>
    } else {
    }
    %c4_i32_9 = arith.constant 4 : i32
    %23 = arith.cmpi sge, %arg0, %c4_i32_9 : i32
    %c5_i32 = arith.constant 5 : i32
    %24 = arith.cmpi slt, %arg0, %c5_i32 : i32
    %25 = arith.andi %23, %24 : i1
    %26 = arith.extui %25 : i1 to i32
    %c0_i32_10 = arith.constant 0 : i32
    %27 = arith.cmpi ne, %26, %c0_i32_10 : i32
    scf.if %27 {
      %c0 = arith.constant 0 : index
      %c0_17 = arith.constant 0 : index
      %41 = vector.load %arg7[%c0, %c0_17] : memref<16x16xf32, #tpu.memory_space<vmem>>, vector<16x16xf32>
      %c0_18 = arith.constant 0 : index
      %c0_19 = arith.constant 0 : index
      %42 = vector.load %arg8[%c0_18, %c0_19] : memref<16x16xf32, #tpu.memory_space<vmem>>, vector<16x16xf32>
      %43 = arith.subf %41, %42 : vector<16x16xf32>
      %44 = math.absf %43 : vector<16x16xf32>
      %c2 = arith.constant 2 : index
      %c0_20 = arith.constant 0 : index
      %45 = memref.load %arg14[%c2, %c0_20] : memref<3x1xf32, #tpu.memory_space<smem>>
      %46 = vector.shape_cast %44 : vector<16x16xf32> to vector<1x16x16xf32>
      %cst = arith.constant dense<0.000000e+00> : vector<1xf32>
      %47 = vector.multi_reduction <add>, %46, %cst [1, 2] : vector<1x16x16xf32> to vector<1xf32>
      %48 = vector.shape_cast %47 : vector<1xf32> to vector<1x1x1xf32>
      %49 = vector.extract %48[0, 0, 0] : f32 from vector<1x1x1xf32>
      %cst_21 = arith.constant 3.906250e-03 : f32
      %50 = arith.mulf %cst_21, %49 : f32
      %51 = arith.addf %45, %50 : f32
      %c2_22 = arith.constant 2 : index
      %c0_23 = arith.constant 0 : index
      %52 = memref.load %arg14[%c2_22, %c0_23] : memref<3x1xf32, #tpu.memory_space<smem>>
      memref.store %51, %arg14[%c2_22, %c0_23] : memref<3x1xf32, #tpu.memory_space<smem>>
    } else {
    }
    %c5_i32_11 = arith.constant 5 : i32
    %28 = arith.cmpi sge, %arg0, %c5_i32_11 : i32
    %c6_i32 = arith.constant 6 : i32
    %29 = arith.cmpi slt, %arg0, %c6_i32 : i32
    %30 = arith.andi %28, %29 : i1
    %31 = arith.extui %30 : i1 to i32
    %c0_i32_12 = arith.constant 0 : i32
    %32 = arith.cmpi ne, %31, %c0_i32_12 : i32
    scf.if %32 {
      %c0 = arith.constant 0 : index
      %c0_17 = arith.constant 0 : index
      %41 = vector.load %arg9[%c0, %c0_17] : memref<8x24xf32, #tpu.memory_space<vmem>>, vector<8x24xf32>
      %c0_18 = arith.constant 0 : index
      %c0_19 = arith.constant 0 : index
      %42 = vector.load %arg10[%c0_18, %c0_19] : memref<8x24xf32, #tpu.memory_space<vmem>>, vector<8x24xf32>
      %43 = arith.subf %41, %42 : vector<8x24xf32>
      %44 = math.absf %43 : vector<8x24xf32>
      %c2 = arith.constant 2 : index
      %c0_20 = arith.constant 0 : index
      %45 = memref.load %arg14[%c2, %c0_20] : memref<3x1xf32, #tpu.memory_space<smem>>
      %46 = vector.shape_cast %44 : vector<8x24xf32> to vector<1x8x24xf32>
      %cst = arith.constant dense<0.000000e+00> : vector<1xf32>
      %47 = vector.multi_reduction <add>, %46, %cst [1, 2] : vector<1x8x24xf32> to vector<1xf32>
      %48 = vector.shape_cast %47 : vector<1xf32> to vector<1x1x1xf32>
      %49 = vector.extract %48[0, 0, 0] : f32 from vector<1x1x1xf32>
      %cst_21 = arith.constant 0.00520833349 : f32
      %50 = arith.mulf %cst_21, %49 : f32
      %51 = arith.addf %45, %50 : f32
      %c2_22 = arith.constant 2 : index
      %c0_23 = arith.constant 0 : index
      %52 = memref.load %arg14[%c2_22, %c0_23] : memref<3x1xf32, #tpu.memory_space<smem>>
      memref.store %51, %arg14[%c2_22, %c0_23] : memref<3x1xf32, #tpu.memory_space<smem>>
    } else {
    }
    %c6_i32_13 = arith.constant 6 : i32
    %33 = arith.cmpi sge, %arg0, %c6_i32_13 : i32
    %c7_i32 = arith.constant 7 : i32
    %34 = arith.cmpi slt, %arg0, %c7_i32 : i32
    %35 = arith.andi %33, %34 : i1
    %36 = arith.extui %35 : i1 to i32
    %c0_i32_14 = arith.constant 0 : i32
    %37 = arith.cmpi ne, %36, %c0_i32_14 : i32
    scf.if %37 {
      %c0 = arith.constant 0 : index
      %c0_17 = arith.constant 0 : index
      %41 = vector.load %arg11[%c0, %c0_17] : memref<16x12xf32, #tpu.memory_space<vmem>>, vector<16x12xf32>
      %c0_18 = arith.constant 0 : index
      %c0_19 = arith.constant 0 : index
      %42 = vector.load %arg12[%c0_18, %c0_19] : memref<16x12xf32, #tpu.memory_space<vmem>>, vector<16x12xf32>
      %43 = arith.subf %41, %42 : vector<16x12xf32>
      %44 = math.absf %43 : vector<16x12xf32>
      %c2 = arith.constant 2 : index
      %c0_20 = arith.constant 0 : index
      %45 = memref.load %arg14[%c2, %c0_20] : memref<3x1xf32, #tpu.memory_space<smem>>
      %46 = vector.shape_cast %44 : vector<16x12xf32> to vector<1x16x12xf32>
      %cst = arith.constant dense<0.000000e+00> : vector<1xf32>
      %47 = vector.multi_reduction <add>, %46, %cst [1, 2] : vector<1x16x12xf32> to vector<1xf32>
      %48 = vector.shape_cast %47 : vector<1xf32> to vector<1x1x1xf32>
      %49 = vector.extract %48[0, 0, 0] : f32 from vector<1x1x1xf32>
      %cst_21 = arith.constant 0.00520833349 : f32
      %50 = arith.mulf %cst_21, %49 : f32
      %51 = arith.addf %45, %50 : f32
      %c2_22 = arith.constant 2 : index
      %c0_23 = arith.constant 0 : index
      %52 = memref.load %arg14[%c2_22, %c0_23] : memref<3x1xf32, #tpu.memory_space<smem>>
      memref.store %51, %arg14[%c2_22, %c0_23] : memref<3x1xf32, #tpu.memory_space<smem>>
    } else {
    }
    %c6_i32_15 = arith.constant 6 : i32
    %38 = arith.cmpi eq, %arg0, %c6_i32_15 : i32
    %39 = arith.extui %38 : i1 to i32
    %c0_i32_16 = arith.constant 0 : i32
    %40 = arith.cmpi ne, %39, %c0_i32_16 : i32
    scf.if %40 {
      %c0 = arith.constant 0 : index
      %c0_17 = arith.constant 0 : index
      %41 = memref.load %arg14[%c0, %c0_17] : memref<3x1xf32, #tpu.memory_space<smem>>
      %c0_18 = arith.constant 0 : index
      %c0_19 = arith.constant 0 : index
      %42 = memref.load %arg13[%c0_18, %c0_19] : memref<3x1xf32, #tpu.memory_space<smem>>
      memref.store %41, %arg13[%c0_18, %c0_19] : memref<3x1xf32, #tpu.memory_space<smem>>
      %c1 = arith.constant 1 : index
      %c0_20 = arith.constant 0 : index
      %43 = memref.load %arg14[%c1, %c0_20] : memref<3x1xf32, #tpu.memory_space<smem>>
      %c1_21 = arith.constant 1 : index
      %c0_22 = arith.constant 0 : index
      %44 = memref.load %arg13[%c1_21, %c0_22] : memref<3x1xf32, #tpu.memory_space<smem>>
      memref.store %43, %arg13[%c1_21, %c0_22] : memref<3x1xf32, #tpu.memory_space<smem>>
      %c2 = arith.constant 2 : index
      %c0_23 = arith.constant 0 : index
      %45 = memref.load %arg14[%c2, %c0_23] : memref<3x1xf32, #tpu.memory_space<smem>>
      %c2_24 = arith.constant 2 : index
      %c0_25 = arith.constant 0 : index
      %46 = memref.load %arg13[%c2_24, %c0_25] : memref<3x1xf32, #tpu.memory_space<smem>>
      memref.store %45, %arg13[%c2_24, %c0_25] : memref<3x1xf32, #tpu.memory_space<smem>>
    } else {
    }
    return
  }
  func.func @transform_0(%arg0: i32) -> (i32, i32) {
    %c0_i32 = arith.constant 0 : i32
    %c0_i32_0 = arith.constant 0 : i32
    %c0_i32_1 = arith.constant 0 : i32
    return %c0_i32, %c0_i32_0 : i32, i32
  }
  func.func @transform_1(%arg0: i32) -> (i32, i32) {
    %c0_i32 = arith.constant 0 : i32
    %c0_i32_0 = arith.constant 0 : i32
    %c0_i32_1 = arith.constant 0 : i32
    return %c0_i32, %c0_i32_0 : i32, i32
  }
  func.func @transform_2(%arg0: i32) -> (i32, i32) {
    %c0_i32 = arith.constant 0 : i32
    %c0_i32_0 = arith.constant 0 : i32
    %c0_i32_1 = arith.constant 0 : i32
    return %c0_i32, %c0_i32_0 : i32, i32
  }
  func.func @transform_3(%arg0: i32) -> (i32, i32) {
    %c0_i32 = arith.constant 0 : i32
    %c0_i32_0 = arith.constant 0 : i32
    %c0_i32_1 = arith.constant 0 : i32
    return %c0_i32, %c0_i32_0 : i32, i32
  }
  func.func @transform_4(%arg0: i32) -> (i32, i32) {
    %c0_i32 = arith.constant 0 : i32
    %c0_i32_0 = arith.constant 0 : i32
    %c0_i32_1 = arith.constant 0 : i32
    return %c0_i32, %c0_i32_0 : i32, i32
  }
  func.func @transform_5(%arg0: i32) -> (i32, i32) {
    %c0_i32 = arith.constant 0 : i32
    %c0_i32_0 = arith.constant 0 : i32
    %c0_i32_1 = arith.constant 0 : i32
    return %c0_i32, %c0_i32_0 : i32, i32
  }
  func.func @transform_6(%arg0: i32) -> (i32, i32) {
    %c0_i32 = arith.constant 0 : i32
    %c0_i32_0 = arith.constant 0 : i32
    %c0_i32_1 = arith.constant 0 : i32
    return %c0_i32, %c0_i32_0 : i32, i32
  }
  func.func @transform_7(%arg0: i32) -> (i32, i32) {
    %c0_i32 = arith.constant 0 : i32
    %c0_i32_0 = arith.constant 0 : i32
    %c0_i32_1 = arith.constant 0 : i32
    return %c0_i32, %c0_i32_0 : i32, i32
  }
  func.func @transform_8(%arg0: i32) -> (i32, i32) {
    %c0_i32 = arith.constant 0 : i32
    %c0_i32_0 = arith.constant 0 : i32
    %c0_i32_1 = arith.constant 0 : i32
    return %c0_i32, %c0_i32_0 : i32, i32
  }
  func.func @transform_9(%arg0: i32) -> (i32, i32) {
    %c0_i32 = arith.constant 0 : i32
    %c0_i32_0 = arith.constant 0 : i32
    %c0_i32_1 = arith.constant 0 : i32
    return %c0_i32, %c0_i32_0 : i32, i32
  }
  func.func @transform_10(%arg0: i32) -> (i32, i32) {
    %c0_i32 = arith.constant 0 : i32
    %c0_i32_0 = arith.constant 0 : i32
    %c0_i32_1 = arith.constant 0 : i32
    return %c0_i32, %c0_i32_0 : i32, i32
  }
  func.func @transform_11(%arg0: i32) -> (i32, i32) {
    %c0_i32 = arith.constant 0 : i32
    %c0_i32_0 = arith.constant 0 : i32
    %c0_i32_1 = arith.constant 0 : i32
    return %c0_i32, %c0_i32_0 : i32, i32
  }
  func.func @transform_12(%arg0: i32) -> (i32, i32) {
    %c0_i32 = arith.constant 0 : i32
    %c0_i32_0 = arith.constant 0 : i32
    %c0_i32_1 = arith.constant 0 : i32
    return %c0_i32, %c0_i32_0 : i32, i32
  }
}

</mosaic_0001>

<bundles_post_ra>
// kernel: generator_loss.1
= control target key start
LH: loop header
LB: loop body
LE: loop exit
PB: predicated region body
PF: predicated region fallthrough
CT: control target
= control target key end

     0   :  { %s1955_s0 = inlined_call_operand.hbm [shape: f32[2,32], index: 0, kind: input, shape index: {}]   ;;  %s1956_s1 = inlined_call_operand.hbm [shape: f32[2,24], index: 1, kind: input, shape index: {}]   ;;  %s1957_s2 = inlined_call_operand.hbm [shape: f32[16,16], index: 2, kind: input, shape index: {}]   ;;  %s1958_s3 = inlined_call_operand.hbm [shape: f32[16,16], index: 3, kind: input, shape index: {}]   ;;  %s1959_s4 = inlined_call_operand.hbm [shape: f32[8,32], index: 4, kind: input, shape index: {}]   ;;  %s1960_s5 = inlined_call_operand.hbm [shape: f32[8,32], index: 5, kind: input, shape index: {}]   ;;  %s1961_s6 = inlined_call_operand.hbm [shape: f32[16,16], index: 6, kind: input, shape index: {}]   ;;  %s1962_s7 = inlined_call_operand.hbm [shape: f32[16,16], index: 7, kind: input, shape index: {}]   ;;  %s1963_s8 = inlined_call_operand.hbm [shape: f32[8,24], index: 8, kind: input, shape index: {}]   ;;  %s1964_s9 = inlined_call_operand.hbm [shape: f32[8,24], index: 9, kind: input, shape index: {}]   ;;  %s1965_s10 = inlined_call_operand.hbm [shape: f32[16,12], index: 10, kind: input, shape index: {}]   ;;  %s1966_s11 = inlined_call_operand.hbm [shape: f32[16,12], index: 11, kind: input, shape index: {}]   ;;  %s1967_s12 = inlined_call_operand.hbm [shape: f32[3,1], index: 12, kind: output, shape index: {}]  }
   0x1   :  { %1970 = sst [smem:[#allocation32_spill]] %s1956_s1 }
   0x2   :  { %1971 = sst [smem:[#allocation33_spill]] %s1958_s3 }
   0x3   :  { %17 = vsyncpa [#allocation4], 0 }
   0x4   :  { %18 = vsyncpa [#allocation7], 0 }
   0x5   :  { %19 = vsyncpa [#allocation10], 0 }
   0x6   :  { %20 = vsyncpa [#allocation13], 0 }
   0x7   :  { %21 = vsyncpa [#allocation16], 0 }
   0x8   :  { %22 = vsyncpa [#allocation19], 0 }
   0x9   :  { %23 = vsyncpa [#allocation22], 0 }
   0xa   :  { %24 = vsyncpa [#allocation5], 0  ;;  %s1588_s21 = smov 0  }
   0xb LB: > { %s1507_s22 = smov [#allocation6]   ;;  %s1594_s24 = sadd.s32 4294967295, %s1505_s21   ;;  %s1505_s21 = sphi %s1588_s21, %s30_s21  }
   0xc   : > { %s332_s23 = sshll.u32 %s1507_s22, 4  ;;  %p915_p0 = scmp.ge.s32.totalorder %s1505_s21, 1  ;;  %s1599_s23 = int_to_ptr.vmem [resolvable:$true] %s332_s23 }
   0xd   : > { %p308_p1 = scmp.lt.s32.totalorder %s1505_s21, 8  ;;  %p1968_p2 = scmp.eq.s32.totalorder %s1594_s24, 0 }
   0xe   : > { %s1508_s26 = smov [#allocation9]   ;;  %s1509_s29 = smov [#allocation12]  }
   0xf   : > { %p1601_p3 = pnand %p915_p0, %p308_p1  ;;  %s355_s27 = sshll.u32 %s1508_s26, 4  ;;  %s1607_s27 = int_to_ptr.vmem [resolvable:$true] %s355_s27 }
  0x10   : > { %s380_s30 = sshll.u32 %s1509_s29, 4  ;;  %s1510_s13 = smov [#allocation15]   ;;  %s1615_s30 = int_to_ptr.vmem [resolvable:$true] %s380_s30 }
  0x11   : > { %s1972_s25 = scalar_select %p1601_p3, 1, 0 }
  0x12   : > { %p1030_p4 = pneg %p1601_p3  ;;  %s1617_s14 = sshll.u32 %s1510_s13, 4  ;;  %s404_s14 = int_to_ptr.vmem [resolvable:$true] %s1617_s14 }
  0x13   : > { %s1974_s1 = sld [smem:[#allocation32_spill]] }
  0x14   : > { %p1611_p5 = pnand %p1968_p2, %p1030_p4 }
  0x16   : > { %p1627_p7 = pneg %p1611_p5 }
  0x19   : > { %s1119_s17 = scalar_lea.hbm %s1974_s1, 32 }
  0x1a   : > { %p1120_p6 = scmp.ne.s32.totalorder %s1974_s1, %s1119_s17  ;;  %p1126_p10 = scmp.lt.u32.totalorder %s1119_s17, %s1974_s1 }
  0x1c   : > { %p1122_p8 = pnand %p1627_p7, %p1120_p6 }
  0x1e   : > { %p1123_p9 = pneg %p1122_p8 }
  0x20   : > { %p1128_p11 = pnand %p1126_p10, %p1123_p9 }
  0x22   : > { %1131 = shalt.err (!%p1128_p11)
}
  0x23   : > { %s1132_s29 = scalar_lea.vmem %s1599_s23, 32  ;;  %p1140_p1 = scmp.lt.s32.totalorder %s1599_s23, %s1599_s23 }
  0x24   : > { %p1133_p12 = scmp.ne.s32.totalorder %s1599_s23, %s1132_s29  ;;  %p1141_p4 = scmp.lt.s32.totalorder %s1132_s29, %s1132_s29 }
  0x26   : > { %p1135_p13 = pnand %p1133_p12, %p1627_p7  ;;  %p1142_p6 = por %p1141_p4, %p1140_p1 }
  0x28   : > { %p1136_p0 = pneg %p1135_p13 }
  0x2a   : > { %p1143_p8 = pnand %p1142_p6, %p1136_p0 }
  0x2c   : > { %1146 = shalt.err (!%p1143_p8)
}
  0x2d   : > { %1036 = dma.hbm_to_vmem [thread:$0]  (!%p1611_p5), %s1974_s1, 32, %s1599_s23, [#allocation7]  }
  0x2e   : > { %s1976_s3 = sld [smem:[#allocation33_spill]] }
  0x34   : > { %s1147_s18 = scalar_lea.hbm %s1976_s3, 256 }
  0x35   : > { %p1148_p9 = scmp.ne.s32.totalorder %s1976_s3, %s1147_s18  ;;  %p1154_p12 = scmp.lt.u32.totalorder %s1147_s18, %s1976_s3 }
  0x37   : > { %p1150_p10 = pnand %p1148_p9, %p1627_p7 }
  0x39   : > { %p1151_p11 = pneg %p1150_p10 }
  0x3b   : > { %p1156_p13 = pnand %p1154_p12, %p1151_p11 }
  0x3d   : > { %1159 = shalt.err (!%p1156_p13)
}
  0x3e   : > { %s1160_s23 = scalar_lea.vmem %s1607_s27, 256  ;;  %p1168_p6 = scmp.lt.s32.totalorder %s1607_s27, %s1607_s27 }
  0x3f   : > { %p1161_p0 = scmp.ne.s32.totalorder %s1607_s27, %s1160_s23  ;;  %p1169_p8 = scmp.lt.s32.totalorder %s1160_s23, %s1160_s23 }
  0x41   : > { %p1163_p1 = pnand %p1161_p0, %p1627_p7  ;;  %p1170_p9 = por %p1169_p8, %p1168_p6 }
  0x43   : > { %p1164_p4 = pneg %p1163_p1 }
  0x45   : > { %p1171_p10 = pnand %p1170_p9, %p1164_p4 }
  0x47   : > { %1174 = shalt.err (!%p1171_p10)
}
  0x48   : > { %s1511_s13 = smov 128   ;;  %s1512_s15 = smov 8  }
  0x49   : > { %1042 = dma.hbm_to_vmem [thread:$0]  (!%p1611_p5), %s1976_s3, 256, %s1607_s27, [#allocation10], %s1511_s13, %s1511_s13, %s1512_s15  }
  0x4a   : > { %s1175_s22 = scalar_lea.hbm %s1960_s5, 128 }
  0x4b   : > { %p1176_p11 = scmp.ne.s32.totalorder %s1960_s5, %s1175_s22  ;;  %p1182_p0 = scmp.lt.u32.totalorder %s1175_s22, %s1960_s5 }
  0x4d   : > { %p1178_p12 = pnand %p1176_p11, %p1627_p7 }
  0x4f   : > { %p1179_p13 = pneg %p1178_p12 }
  0x51   : > { %p1184_p1 = pnand %p1182_p0, %p1179_p13 }
  0x53   : > { %1187 = shalt.err (!%p1184_p1)
}
  0x54   : > { %s1188_s27 = scalar_lea.vmem %s1615_s30, 128  ;;  %p1196_p9 = scmp.lt.s32.totalorder %s1615_s30, %s1615_s30 }
  0x55   : > { %p1189_p4 = scmp.ne.s32.totalorder %s1615_s30, %s1188_s27  ;;  %p1197_p10 = scmp.lt.s32.totalorder %s1188_s27, %s1188_s27 }
  0x57   : > { %p1191_p6 = pnand %p1189_p4, %p1627_p7  ;;  %p1198_p11 = por %p1197_p10, %p1196_p9 }
  0x59   : > { %p1192_p8 = pneg %p1191_p6 }
  0x5b   : > { %p1199_p12 = pnand %p1198_p11, %p1192_p8 }
  0x5d   : > { %1202 = shalt.err (!%p1199_p12)
}
  0x5e   : > { %1048 = dma.hbm_to_vmem [thread:$0]  (!%p1611_p5), %s1960_s5, 128, %s1615_s30, [#allocation13]  }
  0x5f   : > { %s1203_s19 = scalar_lea.hbm %s1962_s7, 256 }
  0x60   : > { %p1204_p13 = scmp.ne.s32.totalorder %s1962_s7, %s1203_s19  ;;  %p1210_p4 = scmp.lt.u32.totalorder %s1203_s19, %s1962_s7 }
  0x62   : > { %p1206_p0 = pnand %p1204_p13, %p1627_p7 }
  0x64   : > { %p1207_p1 = pneg %p1206_p0 }
  0x66   : > { %p1212_p6 = pnand %p1210_p4, %p1207_p1 }
  0x68   : > { %1215 = shalt.err (!%p1212_p6)
}
  0x69   : > { %s1216_s27 = scalar_lea.vmem %s404_s14, 256  ;;  %p1224_p11 = scmp.lt.s32.totalorder %s404_s14, %s404_s14 }
  0x6a   : > { %p1217_p8 = scmp.ne.s32.totalorder %s404_s14, %s1216_s27  ;;  %p1225_p12 = scmp.lt.s32.totalorder %s1216_s27, %s1216_s27 }
  0x6c   : > { %p1219_p9 = pnand %p1217_p8, %p1627_p7  ;;  %p1226_p2 = por %p1225_p12, %p1224_p11 }
  0x6e   : > { %p1220_p10 = pneg %p1219_p9 }
  0x70   : > { %p1227_p3 = pnand %p1226_p2, %p1220_p10 }
  0x72   : > { %1230 = shalt.err (!%p1227_p3)
}
  0x73   : > { %1054 = dma.hbm_to_vmem [thread:$0]  (!%p1611_p5), %s1962_s7, 256, %s404_s14, [#allocation16], %s1511_s13, %s1511_s13, %s1512_s15  }
  0x74   : > { %s1513_s16 = smov [#allocation18]   ;;  %s1514_s18 = smov [#allocation3]  }
  0x75   : > { %s428_s17 = sshll.u32 %s1513_s16, 4  ;;  %s321_s19 = sshll.u32 %s1514_s18, 4  ;;  %s429_s17 = int_to_ptr.vmem [resolvable:$true] %s428_s17  ;;  %s322_s19 = int_to_ptr.vmem [resolvable:$true] %s321_s19 }
  0x76   : > { %s1231_s29 = scalar_lea.hbm %s1964_s9, 128 }
  0x77   : > { %p1232_p2 = scmp.ne.s32.totalorder %s1964_s9, %s1231_s29  ;;  %p1238_p0 = scmp.lt.u32.totalorder %s1231_s29, %s1964_s9 }
  0x79   : > { %p1234_p3 = pnand %p1232_p2, %p1627_p7 }
  0x7b   : > { %p1235_p13 = pneg %p1234_p3 }
  0x7d   : > { %p1240_p1 = pnand %p1238_p0, %p1235_p13 }
  0x7f   : > { %1243 = shalt.err (!%p1240_p1)
}
  0x80   : > { %s1244_s14 = scalar_lea.vmem %s429_s17, 128  ;;  %p1252_p9 = scmp.lt.s32.totalorder %s429_s17, %s429_s17 }
  0x81   : > { %p1245_p4 = scmp.ne.s32.totalorder %s429_s17, %s1244_s14  ;;  %p1253_p10 = scmp.lt.s32.totalorder %s1244_s14, %s1244_s14 }
  0x83   : > { %p1247_p6 = pnand %p1245_p4, %p1627_p7  ;;  %p1254_p11 = por %p1253_p10, %p1252_p9 }
  0x85   : > { %p1248_p8 = pneg %p1247_p6 }
  0x87   : > { %p1255_p12 = pnand %p1254_p11, %p1248_p8 }
  0x89   : > { %1258 = shalt.err (!%p1255_p12)
}
  0x8a   : > { %1060 = dma.hbm_to_vmem [thread:$0]  (!%p1611_p5), %s1964_s9, 128, %s429_s17, [#allocation19]  }
  0x8b   : > { %s1259_s22 = scalar_lea.hbm %s1955_s0, 32 }
  0x8c   : > { %p1260_p2 = scmp.ne.s32.totalorder %s1955_s0, %s1259_s22  ;;  %p1266_p0 = scmp.lt.u32.totalorder %s1259_s22, %s1955_s0 }
  0x8e   : > { %p1262_p3 = pnand %p1260_p2, %p1627_p7 }
  0x90   : > { %p1263_p13 = pneg %p1262_p3 }
  0x92   : > { %p1268_p1 = pnand %p1266_p0, %p1263_p13 }
  0x94   : > { %1271 = shalt.err (!%p1268_p1)
}
  0x95   : > { %s1272_s30 = scalar_lea.vmem %s322_s19, 32  ;;  %p1280_p9 = scmp.lt.s32.totalorder %s322_s19, %s322_s19 }
  0x96   : > { %p1273_p4 = scmp.ne.s32.totalorder %s322_s19, %s1272_s30  ;;  %p1281_p10 = scmp.lt.s32.totalorder %s1272_s30, %s1272_s30 }
  0x98   : > { %p1275_p6 = pnand %p1273_p4, %p1627_p7  ;;  %p1282_p11 = por %p1281_p10, %p1280_p9 }
  0x9a   : > { %p1276_p8 = pneg %p1275_p6 }
  0x9c   : > { %p1283_p12 = pnand %p1282_p11, %p1276_p8 }
  0x9e   : > { %1286 = shalt.err (!%p1283_p12)
}
  0x9f   : > { %1033 = dma.hbm_to_vmem [thread:$0]  (!%p1611_p5), %s1955_s0, 32, %s322_s19, [#allocation4]  }
  0xa0   : > { %s1515_s1 = smov [#allocation8]   ;;  %s1516_s3 = smov [#allocation11]  }
  0xa1   : > { %s342_s16 = sshll.u32 %s1515_s1, 4  ;;  %s369_s18 = sshll.u32 %s1516_s3, 4  ;;  %s343_s16 = int_to_ptr.vmem [resolvable:$true] %s342_s16  ;;  %s370_s18 = int_to_ptr.vmem [resolvable:$true] %s369_s18 }
  0xa2   : > { %s1287_s29 = scalar_lea.hbm %s1957_s2, 256 }
  0xa3   : > { %p1288_p2 = scmp.ne.s32.totalorder %s1957_s2, %s1287_s29  ;;  %p1294_p0 = scmp.lt.u32.totalorder %s1287_s29, %s1957_s2 }
  0xa5   : > { %p1290_p3 = pnand %p1288_p2, %p1627_p7 }
  0xa7   : > { %p1291_p13 = pneg %p1290_p3 }
  0xa9   : > { %p1296_p1 = pnand %p1294_p0, %p1291_p13 }
  0xab   : > { %1299 = shalt.err (!%p1296_p1)
}
  0xac   : > { %s1300_s19 = scalar_lea.vmem %s343_s16, 256  ;;  %p1308_p9 = scmp.lt.s32.totalorder %s343_s16, %s343_s16 }
  0xad   : > { %p1301_p4 = scmp.ne.s32.totalorder %s343_s16, %s1300_s19  ;;  %p1309_p10 = scmp.lt.s32.totalorder %s1300_s19, %s1300_s19 }
  0xaf   : > { %p1303_p6 = pnand %p1301_p4, %p1627_p7  ;;  %p1310_p11 = por %p1309_p10, %p1308_p9 }
  0xb1   : > { %p1304_p8 = pneg %p1303_p6 }
  0xb3   : > { %p1311_p12 = pnand %p1310_p11, %p1304_p8 }
  0xb5   : > { %1314 = shalt.err (!%p1311_p12)
}
  0xb6   : > { %1039 = dma.hbm_to_vmem [thread:$0]  (!%p1611_p5), %s1957_s2, 256, %s343_s16, [#allocation7], %s1511_s13, %s1511_s13, %s1512_s15  }
  0xb7   : > { %s1315_s26 = scalar_lea.hbm %s1959_s4, 128 }
  0xb8   : > { %p1316_p2 = scmp.ne.s32.totalorder %s1959_s4, %s1315_s26  ;;  %p1322_p0 = scmp.lt.u32.totalorder %s1315_s26, %s1959_s4 }
  0xba   : > { %p1318_p3 = pnand %p1316_p2, %p1627_p7 }
  0xbc   : > { %p1319_p13 = pneg %p1318_p3 }
  0xbe   : > { %p1324_p1 = pnand %p1322_p0, %p1319_p13 }
  0xc0   : > { %1327 = shalt.err (!%p1324_p1)
}
  0xc1   : > { %s1328_s17 = scalar_lea.vmem %s370_s18, 128  ;;  %p1336_p9 = scmp.lt.s32.totalorder %s370_s18, %s370_s18 }
  0xc2   : > { %p1329_p4 = scmp.ne.s32.totalorder %s370_s18, %s1328_s17  ;;  %p1337_p10 = scmp.lt.s32.totalorder %s1328_s17, %s1328_s17 }
  0xc4   : > { %p1331_p6 = pnand %p1329_p4, %p1627_p7  ;;  %p1338_p11 = por %p1337_p10, %p1336_p9 }
  0xc6   : > { %p1332_p8 = pneg %p1331_p6 }
  0xc8   : > { %p1339_p12 = pnand %p1338_p11, %p1332_p8 }
  0xca   : > { %1342 = shalt.err (!%p1339_p12)
}
  0xcb   : > { %1045 = dma.hbm_to_vmem [thread:$0]  (!%p1611_p5), %s1959_s4, 128, %s370_s18, [#allocation10]  }
  0xcc   : > { %s1517_s14 = smov [#allocation14]   ;;  %s1518_s3 = smov [#allocation17]  }
  0xcd   : > { %s390_s1 = sshll.u32 %s1517_s14, 4  ;;  %s417_s22 = sshll.u32 %s1518_s3, 4  ;;  %s391_s1 = int_to_ptr.vmem [resolvable:$true] %s390_s1  ;;  %s418_s22 = int_to_ptr.vmem [resolvable:$true] %s417_s22 }
  0xce   : > { %s1343_s23 = scalar_lea.hbm %s1961_s6, 256 }
  0xcf   : > { %p1344_p2 = scmp.ne.s32.totalorder %s1961_s6, %s1343_s23  ;;  %p1350_p0 = scmp.lt.u32.totalorder %s1343_s23, %s1961_s6 }
  0xd1   : > { %p1346_p3 = pnand %p1344_p2, %p1627_p7 }
  0xd3   : > { %p1347_p13 = pneg %p1346_p3 }
  0xd5   : > { %p1352_p1 = pnand %p1350_p0, %p1347_p13 }
  0xd7   : > { %1355 = shalt.err (!%p1352_p1)
}
  0xd8   : > { %s1356_s18 = scalar_lea.vmem %s391_s1, 256  ;;  %p1364_p9 = scmp.lt.s32.totalorder %s391_s1, %s391_s1 }
  0xd9   : > { %p1357_p4 = scmp.ne.s32.totalorder %s391_s1, %s1356_s18  ;;  %p1365_p10 = scmp.lt.s32.totalorder %s1356_s18, %s1356_s18 }
  0xdb   : > { %p1359_p6 = pnand %p1357_p4, %p1627_p7  ;;  %p1366_p11 = por %p1365_p10, %p1364_p9 }
  0xdd   : > { %p1360_p8 = pneg %p1359_p6 }
  0xdf   : > { %p1367_p12 = pnand %p1366_p11, %p1360_p8 }
  0xe1   : > { %1370 = shalt.err (!%p1367_p12)
}
  0xe2   : > { %1051 = dma.hbm_to_vmem [thread:$0]  (!%p1611_p5), %s1961_s6, 256, %s391_s1, [#allocation13], %s1511_s13, %s1511_s13, %s1512_s15  }
  0xe3   : > { %s1371_s29 = scalar_lea.hbm %s1963_s8, 128 }
  0xe4   : > { %p1372_p2 = scmp.ne.s32.totalorder %s1963_s8, %s1371_s29  ;;  %p1378_p0 = scmp.lt.u32.totalorder %s1371_s29, %s1963_s8 }
  0xe6   : > { %p1374_p3 = pnand %p1372_p2, %p1627_p7 }
  0xe8   : > { %p1375_p13 = pneg %p1374_p3 }
  0xea   : > { %p1380_p1 = pnand %p1378_p0, %p1375_p13 }
  0xec   : > { %1383 = shalt.err (!%p1380_p1)
}
  0xed   : > { %s1384_s16 = scalar_lea.vmem %s418_s22, 128  ;;  %p1392_p9 = scmp.lt.s32.totalorder %s418_s22, %s418_s22 }
  0xee   : > { %p1385_p4 = scmp.ne.s32.totalorder %s418_s22, %s1384_s16  ;;  %p1393_p10 = scmp.lt.s32.totalorder %s1384_s16, %s1384_s16 }
  0xf0   : > { %p1387_p6 = pnand %p1385_p4, %p1627_p7  ;;  %p1394_p11 = por %p1393_p10, %p1392_p9 }
  0xf2   : > { %p1388_p8 = pneg %p1387_p6 }
  0xf4   : > { %p1395_p12 = pnand %p1394_p11, %p1388_p8 }
  0xf6   : > { %1398 = shalt.err (!%p1395_p12)
}
  0xf7   : > { %1057 = dma.hbm_to_vmem [thread:$0]  (!%p1611_p5), %s1963_s8, 128, %s418_s22, [#allocation16]  }
  0xf8   : > { %s1519_s19 = smov [#allocation20]   ;;  %s1520_s3 = smov [#allocation21]  }
  0xf9   : > { %s438_s14 = sshll.u32 %s1519_s19, 4  ;;  %s451_s26 = sshll.u32 %s1520_s3, 4  ;;  %s439_s14 = int_to_ptr.vmem [resolvable:$true] %s438_s14  ;;  %s452_s26 = int_to_ptr.vmem [resolvable:$true] %s451_s26 }
  0xfa   : > { %s1399_s27 = scalar_lea.hbm %s1965_s10, 256 }
  0xfb   : > { %p1400_p2 = scmp.ne.s32.totalorder %s1965_s10, %s1399_s27  ;;  %p1406_p0 = scmp.lt.u32.totalorder %s1399_s27, %s1965_s10 }
  0xfd   : > { %p1402_p3 = pnand %p1400_p2, %p1627_p7 }
  0xff   : > { %p1403_p13 = pneg %p1402_p3 }
 0x101   : > { %p1408_p1 = pnand %p1406_p0, %p1403_p13 }
 0x103   : > { %1411 = shalt.err (!%p1408_p1)
}
 0x104   : > { %s1412_s22 = scalar_lea.vmem %s439_s14, 256  ;;  %p1420_p9 = scmp.lt.s32.totalorder %s439_s14, %s439_s14 }
 0x105   : > { %p1413_p4 = scmp.ne.s32.totalorder %s439_s14, %s1412_s22  ;;  %p1421_p10 = scmp.lt.s32.totalorder %s1412_s22, %s1412_s22 }
 0x107   : > { %p1415_p6 = pnand %p1413_p4, %p1627_p7  ;;  %p1422_p11 = por %p1421_p10, %p1420_p9 }
 0x109   : > { %p1416_p8 = pneg %p1415_p6 }
 0x10b   : > { %p1423_p12 = pnand %p1422_p11, %p1416_p8 }
 0x10d   : > { %1426 = shalt.err (!%p1423_p12)
}
 0x10e   : > { %1063 = dma.hbm_to_vmem [thread:$0]  (!%p1611_p5), %s1965_s10, 256, %s439_s14, [#allocation19], %s1511_s13, %s1511_s13, %s1512_s15  }
 0x10f   : > { %s1427_s23 = scalar_lea.hbm %s1966_s11, 256 }
 0x110   : > { %p1428_p2 = scmp.ne.s32.totalorder %s1966_s11, %s1427_s23  ;;  %p1434_p0 = scmp.lt.u32.totalorder %s1427_s23, %s1966_s11 }
 0x112   : > { %p1430_p3 = pnand %p1428_p2, %p1627_p7 }
 0x114   : > { %p1431_p13 = pneg %p1430_p3 }
 0x116   : > { %p1436_p1 = pnand %p1434_p0, %p1431_p13 }
 0x118   : > { %1439 = shalt.err (!%p1436_p1)
}
 0x119   : > { %s1440_s1 = scalar_lea.vmem %s452_s26, 256  ;;  %p1448_p9 = scmp.lt.s32.totalorder %s452_s26, %s452_s26 }
 0x11a   : > { %p1441_p4 = scmp.ne.s32.totalorder %s452_s26, %s1440_s1  ;;  %p1449_p10 = scmp.lt.s32.totalorder %s1440_s1, %s1440_s1 }
 0x11c   : > { %p1443_p6 = pnand %p1441_p4, %p1627_p7  ;;  %p1450_p11 = por %p1449_p10, %p1448_p9 }
 0x11e   : > { %p1444_p8 = pneg %p1443_p6 }
 0x120   : > { %p1451_p12 = pnand %p1450_p11, %p1444_p8 }
 0x122   : > { %1454 = shalt.err (!%p1451_p12)
}
 0x123   : > { %1066 = dma.hbm_to_vmem [thread:$0]  (!%p1611_p5), %s1966_s11, 256, %s452_s26, [#allocation22], %s1511_s13, %s1511_s13, %s1512_s15  }
 0x124   : > { %p1977_p2 = scmp.ne.s32.totalorder %s1972_s25, 0 }
 0x125   : > { %p1978_p7 = scmp.eq.s32.totalorder (!%p1977_p2), %s1594_s24, 0 }
 0x126   : > { %467 = sbr.rel (%p1977_p2) target bundleno = 1873 (0x751), region = 68 }
 0x12d   : > { %1472 = dma.done.wait (%p1978_p7), [#allocation4], 32   ;;  %p1979_p3 = pmov %p1978_p7 }
 0x12f   : > { %1474 = vsyncadd (%p1979_p3), [#allocation4], 4294967264  ;;  %p1980_p13 = pmov %p1979_p3 }
 0x130   : > { %p1981_p0 = pmov %p1979_p3 }
 0x131   : > { %1476 = dma.done.wait (%p1980_p13), [#allocation7], 288  }
 0x132   : > { %1478 = vsyncadd (%p1981_p0), [#allocation7], 4294967008  ;;  %p1982_p1 = pmov %p1981_p0 }
 0x133   : > { %p1983_p5 = pmov %p1981_p0 }
 0x134   : > { %1480 = dma.done.wait (%p1982_p1), [#allocation10], 384  }
 0x135   : > { %1482 = vsyncadd (%p1983_p5), [#allocation10], 4294966912  ;;  %p1984_p4 = pmov %p1981_p0 }
 0x136   : > { %p1985_p6 = pmov %p1981_p0 }
 0x137   : > { %1484 = dma.done.wait (%p1984_p4), [#allocation13], 384  }
 0x138   : > { %1486 = vsyncadd (%p1985_p6), [#allocation13], 4294966912  ;;  %p1986_p8 = pmov %p1981_p0 }
 0x139   : > { %p1987_p9 = pmov %p1981_p0 }
 0x13a   : > { %1488 = dma.done.wait (%p1986_p8), [#allocation16], 384  }
 0x13b   : > { %1490 = vsyncadd (%p1987_p9), [#allocation16], 4294966912  ;;  %p1988_p10 = pmov %p1981_p0 }
 0x13c   : > { %p1989_p11 = pmov %p1981_p0 }
 0x13d   : > { %1492 = dma.done.wait (%p1988_p10), [#allocation19], 384  }
 0x13e   : > { %1494 = vsyncadd (%p1989_p11), [#allocation19], 4294966912  ;;  %p1990_p12 = pmov %p1981_p0 }
 0x13f   : > { %p1991_p2 = pmov %p1981_p0 }
 0x140   : > { %1496 = dma.done.wait (%p1990_p12), [#allocation22], 256  }
 0x141   : > { %1498 = vsyncadd (%p1991_p2), [#allocation22], 4294967040  ;;  %p553_p7 = scmp.ge.s32.totalorder %s1594_s24, 0  ;;  %s1521_s25 = smov 0.0  }
 0x142   : > { %p1992_p3 = pmov %p1981_p0  ;;  %p554_p13 = scmp.lt.s32.totalorder %s1594_s24, 1 }
 0x143   : > { %1020 = sst [smem:[#allocation2 + $0x80]] (%p1981_p0), %s1521_s25  ;;  %p1993_p1 = pmov %p1981_p0 }
 0x144   : > { %1019 = sst [smem:[#allocation2]] (%p1992_p3), %s1521_s25  ;;  %p555_p5 = pnand %p554_p13, %p553_p7 }
 0x145   : > { %1021 = sst [smem:[#allocation2 + $0x100]] (%p1993_p1), %s1521_s25  ;;  %v559_v0 = vld [vmem:[#allocation3] sm:$0x3] (!%p555_p5)  ;;  %vm563_vm0 = vcmask (!%p555_p5), 254976  }
 0x146   : > { %558 = sbr.rel (%p555_p5) target bundleno = 540 (0x21c), region = 124  ;;  %v942_v1 = vadd.f32 (!%p555_p5), -1.0, %v559_v0  ;;  %s562_s28 = sld [smem:[#allocation2]] (!%p555_p5) }
 0x148   : > { %v561_v2 = vmul.f32 (!%p555_p5), %v942_v1, %v942_v1 }
 0x14a   : > { %v564_v3 = vsel (!%p555_p5), %vm563_vm0, %v561_v2, 0.0 }
 0x14b   : > { %565 = vadd.xlane.f32.xlu0 (!%p555_p5), %v564_v3 }
 0x1d8   : > { %v566_v4 = vpop.xlane.xlu0 %565 }
 0x1d9   : > { %v567_v5 = vrot.slane %v566_v4, 4 }
 0x1db   : > { %v568_v6 = vadd.f32 %v567_v5, %v566_v4 }
 0x1dd   : > { %v569_v7 = vrot.slane %v568_v6, 2 }
 0x1df   : > { %v570_v8 = vadd.f32 %v569_v7, %v568_v6 }
 0x1e1   : > { %v571_v9 = vrot.slane %v570_v8, 1 }
 0x1e3   : > { %v572_v10 = vadd.f32 %v571_v9, %v570_v8 }
 0x1e5   : > { %956 = vpush %v572_v10 }
 0x216   : > { %s957_s20 = spop %956 }
 0x217   : > { %s574_s13 = smul.f32 0.015625, %s957_s20 }
 0x219   : > { %s575_s15 = sadd.f32 %s574_s13, %s562_s28 }
 0x21b   : > { %577 = sst [smem:[#allocation2]] %s575_s15 }
 0x21c PF: > { %p578_p4 = scmp.ge.s32.totalorder %s1594_s24, 1  ;;  %p579_p6 = scmp.lt.s32.totalorder %s1594_s24, 2 }
 0x21e   : > { %p580_p8 = pnand %p579_p6, %p578_p4 }
 0x21f   : > { %v584_v11 = vld [vmem:[#allocation6] sm:$0x3] (!%p580_p8)  ;;  %vm588_vm1 = vcmask (!%p580_p8), 189440   ;;  %s587_s26 = sld [smem:[#allocation2]] (!%p580_p8) }
 0x220   : > { %583 = sbr.rel (%p580_p8) target bundleno = 758 (0x2f6), region = 128  ;;  %v943_v12 = vadd.f32 (!%p580_p8), -1.0, %v584_v11 }
 0x222   : > { %v586_v13 = vmul.f32 (!%p580_p8), %v943_v12, %v943_v12 }
 0x224   : > { %v589_v14 = vsel (!%p580_p8), %vm588_vm1, %v586_v13, 0.0 }
 0x225   : > { %590 = vadd.xlane.f32.xlu0 (!%p580_p8), %v589_v14 }
 0x2b2   : > { %v591_v15 = vpop.xlane.xlu0 %590 }
 0x2b3   : > { %v592_v16 = vrot.slane %v591_v15, 4 }
 0x2b5   : > { %v593_v17 = vadd.f32 %v592_v16, %v591_v15 }
 0x2b7   : > { %v594_v18 = vrot.slane %v593_v17, 2 }
 0x2b9   : > { %v595_v19 = vadd.f32 %v594_v18, %v593_v17 }
 0x2bb   : > { %v596_v20 = vrot.slane %v595_v19, 1 }
 0x2bd   : > { %v597_v21 = vadd.f32 %v596_v20, %v595_v19 }
 0x2bf   : > { %958 = vpush %v597_v21 }
 0x2f0   : > { %s959_s18 = spop %958 }
 0x2f1   : > { %s599_s19 = smul.f32 0.020833334, %s959_s18 }
 0x2f3   : > { %s600_s3 = sadd.f32 %s599_s19, %s587_s26 }
 0x2f5   : > { %602 = sst [smem:[#allocation2]] %s600_s3 }
 0x2f6 PF: > { %p603_p9 = scmp.ge.s32.totalorder %s1594_s24, 2  ;;  %p604_p10 = scmp.lt.s32.totalorder %s1594_s24, 3 }
 0x2f8   : > { %p605_p11 = pnand %p604_p10, %p603_p9 }
 0x2f9   : > { %v609_v22 = vld [vmem:[#allocation8] sm:$0xff] (!%p605_p11)  ;;  %v610_v23 = vld [vmem:[#allocation8 + $0x8] sm:$0xff] (!%p605_p11)  ;;  %v611_v24 = vld [vmem:[#allocation9] sm:$0xff] (!%p605_p11)  ;;  %vm618_vm2 = vcmask (!%p605_p11), 130048   ;;  %s944_s29 = sld [smem:[#allocation2 + $0x80]] (!%p605_p11) }
 0x2fa   : > { %608 = sbr.rel (%p605_p11) target bundleno = 979 (0x3d3), region = 132  ;;  %v612_v25 = vld [vmem:[#allocation9 + $0x8] sm:$0xff] (!%p605_p11)  ;;  %v613_v26 = vsub.f32 (!%p605_p11), %v609_v22, %v611_v24 }
 0x2fb   : > { %v614_v27 = vsub.f32 (!%p605_p11), %v610_v23, %v612_v25 }
 0x2fc   : > { %v615_v28 = vand.u32 (!%p605_p11), 2147483647, %v613_v26 }
 0x2fd   : > { %v616_v29 = vand.u32 (!%p605_p11), 2147483647, %v614_v27 }
 0x2fe   : > { %v619_v30 = vsel (!%p605_p11), %vm618_vm2, %v615_v28, 0.0 }
 0x2ff   : > { %v620_v31 = vsel (!%p605_p11), %vm618_vm2, %v616_v29, 0.0 }
 0x300   : > { %v621_v32 = vadd.f32 (!%p605_p11), %v620_v31, %v619_v30 }
 0x302   : > { %622 = vadd.xlane.f32.xlu0 %v621_v32 }
 0x38f   : > { %v623_v33 = vpop.xlane.xlu0 %622 }
 0x390   : > { %v624_v34 = vrot.slane %v623_v33, 4 }
 0x392   : > { %v625_v35 = vadd.f32 %v624_v34, %v623_v33 }
 0x394   : > { %v626_v36 = vrot.slane %v625_v35, 2 }
 0x396   : > { %v627_v37 = vadd.f32 %v626_v36, %v625_v35 }
 0x398   : > { %v628_v38 = vrot.slane %v627_v37, 1 }
 0x39a   : > { %v629_v39 = vadd.f32 %v628_v38, %v627_v37 }
 0x39c   : > { %960 = vpush %v629_v39 }
 0x3cd   : > { %s961_s23 = spop %960 }
 0x3ce   : > { %s631_s27 = smul.f32 0.00390625, %s961_s23 }
 0x3d0   : > { %s632_s30 = sadd.f32 %s944_s29, %s631_s27 }
 0x3d2   : > { %634 = sst [smem:[#allocation2 + $0x80]] %s632_s30 }
 0x3d3 PF: > { %p635_p12 = scmp.ge.s32.totalorder %s1594_s24, 3  ;;  %p636_p2 = scmp.lt.s32.totalorder %s1594_s24, 4 }
 0x3d5   : > { %p637_p7 = pnand %p636_p2, %p635_p12 }
 0x3d6   : > { %v641_v40 = vld [vmem:[#allocation11] sm:$0xff] (!%p637_p7)  ;;  %v642_v41 = vld [vmem:[#allocation12] sm:$0xff] (!%p637_p7)  ;;  %vm646_vm3 = vcmask (!%p637_p7), 261120   ;;  %s945_s17 = sld [smem:[#allocation2 + $0x100]] (!%p637_p7) }
 0x3d7   : > { %640 = sbr.rel (%p637_p7) target bundleno = 1197 (0x4ad), region = 136  ;;  %v643_v42 = vsub.f32 (!%p637_p7), %v641_v40, %v642_v41 }
 0x3d9   : > { %v644_v43 = vand.u32 (!%p637_p7), 2147483647, %v643_v42 }
 0x3db   : > { %v647_v44 = vsel (!%p637_p7), %vm646_vm3, %v644_v43, 0.0 }
 0x3dc   : > { %648 = vadd.xlane.f32.xlu0 (!%p637_p7), %v647_v44 }
 0x469   : > { %v649_v45 = vpop.xlane.xlu0 %648 }
 0x46a   : > { %v650_v46 = vrot.slane %v649_v45, 4 }
 0x46c   : > { %v651_v47 = vadd.f32 %v650_v46, %v649_v45 }
 0x46e   : > { %v652_v48 = vrot.slane %v651_v47, 2 }
 0x470   : > { %v653_v49 = vadd.f32 %v652_v48, %v651_v47 }
 0x472   : > { %v654_v50 = vrot.slane %v653_v49, 1 }
 0x474   : > { %v655_v51 = vadd.f32 %v654_v50, %v653_v49 }
 0x476   : > { %962 = vpush %v655_v51 }
 0x4a7   : > { %s963_s16 = spop %962 }
 0x4a8   : > { %s657_s1 = smul.f32 0.00390625, %s963_s16 }
 0x4aa   : > { %s658_s14 = sadd.f32 %s945_s17, %s657_s1 }
 0x4ac   : > { %660 = sst [smem:[#allocation2 + $0x100]] %s658_s14 }
 0x4ad PF: > { %p661_p3 = scmp.ge.s32.totalorder %s1594_s24, 4  ;;  %p662_p13 = scmp.lt.s32.totalorder %s1594_s24, 5 }
 0x4af   : > { %p663_p0 = pnand %p662_p13, %p661_p3 }
 0x4b0   : > { %v667_v52 = vld [vmem:[#allocation14] sm:$0xff] (!%p663_p0)  ;;  %v668_v53 = vld [vmem:[#allocation14 + $0x8] sm:$0xff] (!%p663_p0)  ;;  %v669_v54 = vld [vmem:[#allocation15] sm:$0xff] (!%p663_p0)  ;;  %vm676_vm4 = vcmask (!%p663_p0), 130048   ;;  %s946_s22 = sld [smem:[#allocation2 + $0x100]] (!%p663_p0) }
 0x4b1   : > { %666 = sbr.rel (%p663_p0) target bundleno = 1418 (0x58a), region = 140  ;;  %v670_v55 = vld [vmem:[#allocation15 + $0x8] sm:$0xff] (!%p663_p0)  ;;  %v671_v56 = vsub.f32 (!%p663_p0), %v667_v52, %v669_v54 }
 0x4b2   : > { %v672_v57 = vsub.f32 (!%p663_p0), %v668_v53, %v670_v55 }
 0x4b3   : > { %v673_v58 = vand.u32 (!%p663_p0), 2147483647, %v671_v56 }
 0x4b4   : > { %v674_v59 = vand.u32 (!%p663_p0), 2147483647, %v672_v57 }
 0x4b5   : > { %v677_v60 = vsel (!%p663_p0), %vm676_vm4, %v673_v58, 0.0 }
 0x4b6   : > { %v678_v61 = vsel (!%p663_p0), %vm676_vm4, %v674_v59, 0.0 }
 0x4b7   : > { %v679_v62 = vadd.f32 (!%p663_p0), %v678_v61, %v677_v60 }
 0x4b9   : > { %680 = vadd.xlane.f32.xlu0 %v679_v62 }
 0x546   : > { %v681_v63 = vpop.xlane.xlu0 %680 }
 0x547   : > { %v682_v0 = vrot.slane %v681_v63, 4 }
 0x549   : > { %v683_v1 = vadd.f32 %v682_v0, %v681_v63 }
 0x54b   : > { %v684_v2 = vrot.slane %v683_v1, 2 }
 0x54d   : > { %v685_v3 = vadd.f32 %v684_v2, %v683_v1 }
 0x54f   : > { %v686_v4 = vrot.slane %v685_v3, 1 }
 0x551   : > { %v687_v5 = vadd.f32 %v686_v4, %v685_v3 }
 0x553   : > { %964 = vpush %v687_v5 }
 0x584   : > { %s965_s25 = spop %964 }
 0x585   : > { %s689_s28 = smul.f32 0.00390625, %s965_s25 }
 0x587   : > { %s690_s20 = sadd.f32 %s946_s22, %s689_s28 }
 0x589   : > { %692 = sst [smem:[#allocation2 + $0x100]] %s690_s20 }
 0x58a PF: > { %p693_p1 = scmp.ge.s32.totalorder %s1594_s24, 5  ;;  %p694_p5 = scmp.lt.s32.totalorder %s1594_s24, 6 }
 0x58c   : > { %p695_p4 = pnand %p694_p5, %p693_p1 }
 0x58d   : > { %v699_v6 = vld [vmem:[#allocation17] sm:$0xff] (!%p695_p4)  ;;  %v700_v7 = vld [vmem:[#allocation18] sm:$0xff] (!%p695_p4)  ;;  %vm704_vm5 = vcmask (!%p695_p4), 195584   ;;  %s947_s13 = sld [smem:[#allocation2 + $0x100]] (!%p695_p4) }
 0x58e   : > { %698 = sbr.rel (%p695_p4) target bundleno = 1636 (0x664), region = 144  ;;  %v701_v8 = vsub.f32 (!%p695_p4), %v699_v6, %v700_v7 }
 0x590   : > { %v702_v9 = vand.u32 (!%p695_p4), 2147483647, %v701_v8 }
 0x592   : > { %v705_v10 = vsel (!%p695_p4), %vm704_vm5, %v702_v9, 0.0 }
 0x593   : > { %706 = vadd.xlane.f32.xlu0 (!%p695_p4), %v705_v10 }
 0x620   : > { %v707_v11 = vpop.xlane.xlu0 %706 }
 0x621   : > { %v708_v12 = vrot.slane %v707_v11, 4 }
 0x623   : > { %v709_v13 = vadd.f32 %v708_v12, %v707_v11 }
 0x625   : > { %v710_v14 = vrot.slane %v709_v13, 2 }
 0x627   : > { %v711_v15 = vadd.f32 %v710_v14, %v709_v13 }
 0x629   : > { %v712_v16 = vrot.slane %v711_v15, 1 }
 0x62b   : > { %v713_v17 = vadd.f32 %v712_v16, %v711_v15 }
 0x62d   : > { %966 = vpush %v713_v17 }
 0x65e   : > { %s967_s15 = spop %966 }
 0x65f   : > { %s715_s26 = smul.f32 0.0052083335, %s967_s15 }
 0x661   : > { %s716_s18 = sadd.f32 %s947_s13, %s715_s26 }
 0x663   : > { %718 = sst [smem:[#allocation2 + $0x100]] %s716_s18 }
 0x664 PF: > { %p719_p6 = scmp.ge.s32.totalorder %s1594_s24, 6  ;;  %p720_p8 = scmp.lt.s32.totalorder %s1594_s24, 7 }
 0x666   : > { %p721_p9 = pnand %p720_p8, %p719_p6 }
 0x667   : > { %v725_v18 = vld [vmem:[#allocation20] sm:$0xff] (!%p721_p9)  ;;  %v726_v19 = vld [vmem:[#allocation20 + $0x8] sm:$0xff] (!%p721_p9)  ;;  %v727_v20 = vld [vmem:[#allocation21] sm:$0xff] (!%p721_p9)  ;;  %vm734_vm6 = vcmask (!%p721_p9), 97280   ;;  %s948_s19 = sld [smem:[#allocation2 + $0x100]] (!%p721_p9) }
 0x668   : > { %724 = sbr.rel (%p721_p9) target bundleno = 1857 (0x741), region = 148  ;;  %v728_v21 = vld [vmem:[#allocation21 + $0x8] sm:$0xff] (!%p721_p9)  ;;  %v729_v22 = vsub.f32 (!%p721_p9), %v725_v18, %v727_v20 }
 0x669   : > { %v730_v23 = vsub.f32 (!%p721_p9), %v726_v19, %v728_v21 }
 0x66a   : > { %v731_v24 = vand.u32 (!%p721_p9), 2147483647, %v729_v22 }
 0x66b   : > { %v732_v25 = vand.u32 (!%p721_p9), 2147483647, %v730_v23 }
 0x66c   : > { %v735_v26 = vsel (!%p721_p9), %vm734_vm6, %v731_v24, 0.0 }
 0x66d   : > { %v736_v27 = vsel (!%p721_p9), %vm734_vm6, %v732_v25, 0.0 }
 0x66e   : > { %v737_v28 = vadd.f32 (!%p721_p9), %v736_v27, %v735_v26 }
 0x670   : > { %738 = vadd.xlane.f32.xlu0 %v737_v28 }
 0x6fd   : > { %v739_v29 = vpop.xlane.xlu0 %738 }
 0x6fe   : > { %v740_v30 = vrot.slane %v739_v29, 4 }
 0x700   : > { %v741_v31 = vadd.f32 %v740_v30, %v739_v29 }
 0x702   : > { %v742_v32 = vrot.slane %v741_v31, 2 }
 0x704   : > { %v743_v33 = vadd.f32 %v742_v32, %v741_v31 }
 0x706   : > { %v744_v34 = vrot.slane %v743_v33, 1 }
 0x708   : > { %v745_v35 = vadd.f32 %v744_v34, %v743_v33 }
 0x70a   : > { %968 = vpush %v745_v35 }
 0x73b   : > { %s969_s3 = spop %968 }
 0x73c   : > { %s747_s29 = smul.f32 0.0052083335, %s969_s3 }
 0x73e   : > { %s748_s23 = sadd.f32 %s948_s19, %s747_s29 }
 0x740   : > { %750 = sst [smem:[#allocation2 + $0x100]] %s748_s23 }
 0x741 PF: > { %s755_s27 = sld [smem:[#allocation2]]  ;;  %p1092_p10 = scmp.eq.s32.totalorder %s1594_s24, 6 }
 0x742   : > { %s950_s30 = sld [smem:[#allocation2 + $0x80]]  ;;  %s1455_s14 = scalar_lea.hbm %s1967_s12, 64 }
 0x743   : > { %s951_s17 = sld [smem:[#allocation2 + $0x100]]  ;;  %p1456_p11 = scmp.ne.s32.totalorder %s1967_s12, %s1455_s14 }
 0x744   : > { %p1461_p7 = scmp.lt.u32.totalorder %s1455_s14, %s1967_s12 }
 0x745   : > { %p1457_p12 = pnand %p1456_p11, %p1092_p10 }
 0x747   : > { %1023 = sst [smem:[#allocation23]] (%p1092_p10), %s755_s27  ;;  %p1458_p2 = pneg %p1457_p12 }
 0x748   : > { %1024 = sst [smem:[#allocation23 + $0x80]] (%p1092_p10), %s950_s30 }
 0x749   : > { %1025 = sst [smem:[#allocation23 + $0x100]] (%p1092_p10), %s951_s17  ;;  %p1463_p3 = pnand %p1461_p7, %p1458_p2 }
 0x74b   : > { %1466 = shalt.err (!%p1463_p3)
}
 0x74c   : > { %s1522_s13 = smov [#allocation23]  }
 0x74d   : > { %1027 = dma.smem_to_hbm (%p1092_p10), %s1522_s13, 64, %s1967_s12, [#allocation5]  }
 0x74e   : > { %1500 = dma.done.wait (%p1092_p10), [#allocation5], 64  }
 0x74f   : > { %1502 = vsyncadd (%p1092_p10), [#allocation5], 4294967232 }
 0x750   : > { %777 = sfence }
 0x751 PF: > { %s30_s21 = sadd.s32 1, %s1505_s21  }
 0x752   : > { %p27_p13 = scmp.ge.s32.totalorder %s30_s21, 9  }
 0x754   :  { %29 = sbr.rel (!%p27_p13) target bundleno = 11 (0xb), region = 190 }
 0x75b   :  { %783 = vsyncpa [#allocation4], 1 }
 0x75c   :  { %785 = vsyncpa [#allocation4 + $0x1], 1 }
 0x75d   :  { %786 = vsyncpa [#allocation7], 1 }
 0x75e   :  { %787 = vsyncpa [#allocation10], 1 }
 0x75f   :  { %788 = vsyncpa [#allocation13], 1 }
 0x760   :  { %789 = vsyncpa [#allocation16], 1 }
 0x761   :  { %790 = vsyncpa [#allocation19], 1 }
 0x762   :  { %791 = vsyncpa [#allocation22], 1 }
 0x763   :  { %792 = vsyncpa [#allocation5], 1 }
 0x764   :  { %794 = vsyncpa [#allocation5 + $0x1], 1 }

</bundles_post_ra>
